<compile_context>
chip_gen: v5e
topology: v5e:2x2
jax: 0.10.0
libtpu: 0.0.40
codegen_flags: <defaults>
</compile_context>

<pallas_src>
import jax
import jax.numpy as jnp
import numpy as np
from jax import lax
from jax.experimental import pallas as pl
from jax.experimental.pallas import tpu as pltpu

settings = {'window_size': 2, 'hidden_size': 4, 'epochs': 50, 'lr': 0.01}

_LANES = 128      # TPU vreg lane width  -> pad vocab axis of the output to this
_SUBLANES = 8     # TPU vreg sublane count


def _round_up(n, m):
    return (n + m - 1) // m * m


def _fold_params(w1, b1, w2, b2, vp):
    """Fold the two Linear layers into one padded weight / bias (wrapper, one-time).

    Wc[v_in, v_out] = sum_h w1[h, v_in] * w2[v_out, h]   (== W1^T @ W2^T, no .T ops)
    bc[v_out]       = sum_h w2[v_out, h] * b1[h] + b2[v_out]
    Padded on the output-vocab axis to `vp` lanes so the kernel store is lane-dense.
    """
    V = w1.shape[1]
    wc = lax.dot_general(w1, w2, dimension_numbers=(((0,), (1,)), ((), ())))  # [V, V]
    bc = jnp.dot(w2, b1) + b2                                                 # [V]
    wc_pad = jnp.pad(wc, ((0, 0), (0, vp - V)))                               # [V, VP]
    bc_pad = jnp.pad(bc, (0, vp - V)).reshape(1, vp)                          # [1, VP]
    return wc_pad, bc_pad


# ----------------------------------------------------------------------------- kernels

def _dense_fwd_kernel(x_ref, wc_ref, bc_ref, z_ref):
    # General input: z = x @ Wc + bc  (single MXU pass, f32 accumulate, lane-dense store)
    z_ref[...] = (
        jnp.dot(x_ref[...], wc_ref[...], preferred_element_type=jnp.float32)
        + bc_ref[...]
    ).astype(z_ref.dtype)


def _onehot_fwd_kernel(ids_ref, wc_ref, bc_ref, z_ref):
    # One-hot input: x @ Wc is a row gather -> z[i] = Wc[ids[i]] + bc.  No MXU work.
    # ids live in SMEM; wc_ref is [V, 1, VP] so a dynamic first-axis index yields (1, VP).
    bias = bc_ref[...]                       # (1, VP)
    for i in range(z_ref.shape[0]):          # static, tiny batch -> fully unrolled
        row = ids_ref[i]                     # scalar token id from SMEM
        z_ref[pl.ds(i, 1), :] = wc_ref[row] + bias


# ----------------------------------------------------------------------------- wrappers

def word2vec_forward(x, w1, b1, w2, b2):
    """General forward matching the PyTorch module: x [B, V] f32 -> z [B, V] f32."""
    B, V = x.shape
    VP = _round_up(V, _LANES)
    BP = _round_up(B, _SUBLANES)
    wc_pad, bc_pad = _fold_params(w1, b1, w2, b2, VP)
    x_pad = jnp.pad(x, ((0, BP - B), (0, 0))) if BP != B else x

    full = lambda shape: pl.BlockSpec(shape, lambda: (0,) * len(shape))
    z_pad = pl.pallas_call(
        _dense_fwd_kernel,
        out_shape=jax.ShapeDtypeStruct((BP, VP), jnp.float32),
        in_specs=[
            full((BP, V)),    # x
            full((V, VP)),    # folded weight Wc (lane-padded)
            full((1, VP)),    # folded bias bc
        ],
        out_specs=full((BP, VP)),   # (8, 128): one full vreg, unmasked store
    )(x_pad, wc_pad, bc_pad)
    return z_pad[:B, :V]


def word2vec_forward_onehot(ids, vocab_size, w1, b1, w2, b2):
    """One-hot fast path: ids [B] int32 -> z [B, V] (== forward(one_hot(ids)))."""
    B = ids.shape[0]
    V = vocab_size
    VP = _round_up(V, _LANES)
    BP = _round_up(B, _SUBLANES)
    wc_pad, bc_pad = _fold_params(w1, b1, w2, b2, VP)
    wc3 = wc_pad.reshape(V, 1, VP)           # leading axis for dynamic row indexing
    ids_pad = jnp.pad(ids, (0, BP - B)) if BP != B else ids

    z_pad = pl.pallas_call(
        _onehot_fwd_kernel,
        out_shape=jax.ShapeDtypeStruct((BP, VP), jnp.float32),
        in_specs=[
            pl.BlockSpec(memory_space=pltpu.MemorySpace.SMEM),   # token ids (scalars)
            pl.BlockSpec((V, 1, VP), lambda: (0, 0, 0)),         # folded weight rows
            pl.BlockSpec((1, VP), lambda: (0, 0)),               # folded bias
        ],
        out_specs=pl.BlockSpec((BP, VP), lambda: (0, 0)),
    )(ids_pad, wc3, bc_pad)
    return z_pad[:B, :V]


def _init_linear(key, out_features, in_features):
    # Deterministic init mimicking torch.nn.Linear: U(-1/sqrt(fan_in), +1/sqrt(fan_in))
    kw, kb = jax.random.split(key)
    bound = 1.0 / np.sqrt(in_features)
    w = jax.random.uniform(kw, (out_features, in_features),
                           dtype=jnp.float32, minval=-bound, maxval=bound)
    b = jax.random.uniform(kb, (out_features,),
                           dtype=jnp.float32, minval=-bound, maxval=bound)
    return w, b


if __name__ == "__main__":
    vocab_size = 16
    hidden_size = settings['hidden_size']   # 4
    batch = 8

    key = jax.random.PRNGKey(0)
    k_x, k_w1, k_w2 = jax.random.split(key, 3)

    # Word2Vec inputs are one-hot rows over the vocabulary.
    ids = jax.random.randint(k_x, (batch,), 0, vocab_size, dtype=jnp.int32)
    x = jax.nn.one_hot(ids, vocab_size, dtype=jnp.float32)       # [B, V]

    w1, b1 = _init_linear(k_w1, hidden_size, vocab_size)          # W1: [H, V], [H]
    w2, b2 = _init_linear(k_w2, vocab_size, hidden_size)          # W2: [V, H], [V]

    # General (arbitrary-x) path: folded single-matmul kernel.
    z_dense = jax.block_until_ready(word2vec_forward(x, w1, b1, w2, b2))
    # One-hot fast path: SMEM ids + row-gather kernel (what training actually feeds).
    z_gather = jax.block_until_ready(
        word2vec_forward_onehot(ids, vocab_size, w1, b1, w2, b2))

    # Pure-JAX reference of the original two-layer forward.
    z_ref = (x @ w1.T + b1) @ w2.T + b2
    np.testing.assert_allclose(np.asarray(z_dense), np.asarray(z_ref),
                               rtol=1e-5, atol=1e-5)
    np.testing.assert_allclose(np.asarray(z_gather), np.asarray(z_ref),
                               rtol=1e-5, atol=1e-5)

    # TODO(synk): training loop / dataset utilities of the PyTorch file are out of
    # scope for the forward-pass kernel; fuse softmax/loss here if used per-step.
    print("KERNEL_OK")
</pallas_src>

<mosaic_0001>
module attributes {stable_mosaic.version = 11 : i64} {
  func.func @_dense_fwd_kernel(%arg0: memref<8x16xf32, #tpu.memory_space<vmem>>, %arg1: memref<16x128xf32, #tpu.memory_space<vmem>>, %arg2: memref<1x128xf32, #tpu.memory_space<vmem>>, %arg3: memref<8x128xf32, #tpu.memory_space<vmem>>) attributes {dimension_semantics = [], scalar_prefetch = 0 : i64, scratch_operands = 0 : i64, tpu.core_type = #tpu.core_type<tc>} {
    %c0 = arith.constant 0 : index
    %c0_0 = arith.constant 0 : index
    %0 = vector.load %arg0[%c0, %c0_0] : memref<8x16xf32, #tpu.memory_space<vmem>>, vector<8x16xf32>
    %c0_1 = arith.constant 0 : index
    %c0_2 = arith.constant 0 : index
    %1 = vector.load %arg1[%c0_1, %c0_2] : memref<16x128xf32, #tpu.memory_space<vmem>>, vector<16x128xf32>
    %cst = arith.constant dense<0.000000e+00> : vector<8x128xf32>
    %2 = tpu.matmul %0, %1, %cst {dimension_numbers = #tpu.dot_dimension_numbers<[1], [0], [0], [1], [0, 0, 1, 1], [], []>} : vector<8x16xf32>, vector<16x128xf32>, vector<8x128xf32> -> vector<8x128xf32>
    %c0_3 = arith.constant 0 : index
    %c0_4 = arith.constant 0 : index
    %3 = vector.load %arg2[%c0_3, %c0_4] : memref<1x128xf32, #tpu.memory_space<vmem>>, vector<1x128xf32>
    %4 = vector.broadcast %3 : vector<1x128xf32> to vector<8x128xf32>
    %5 = arith.addf %2, %4 : vector<8x128xf32>
    %c0_5 = arith.constant 0 : index
    %c0_6 = arith.constant 0 : index
    %6 = vector.load %arg3[%c0_5, %c0_6] : memref<8x128xf32, #tpu.memory_space<vmem>>, vector<8x128xf32>
    tpu.vector_store %arg3[%c0_5, %c0_6], %5 {strides = array<i32>} : memref<8x128xf32, #tpu.memory_space<vmem>>, vector<8x128xf32>,
    return
  }
}

</mosaic_0001>

<bundles_post_ra>
// kernel: tpu_custom_call.1
= control target key start
LH: loop header
LB: loop body
LE: loop exit
PB: predicated region body
PF: predicated region fallthrough
CT: control target
= control target key end

     0   :  { %8 = vsyncpa [#allocation3], 0  ;;  %s217_s0 = inlined_call_operand.hbm [shape: f32[8,16], index: 0, kind: input, shape index: {}]   ;;  %s218_s1 = inlined_call_operand.hbm [shape: f32[16,128], index: 1, kind: input, shape index: {}]   ;;  %s219_s2 = inlined_call_operand.vmem [shape: f32[1,128], index: 2, kind: input, shape index: {}]   ;;  %s220_s3 = inlined_call_operand.hbm [shape: f32[8,128], index: 3, kind: output, shape index: {}]  }
   0x1   :  { %9 = vsyncpa [#allocation6], 0 }
   0x2   :  { %10 = vsyncpa [#allocation4], 0  ;;  %s16_s14 = sshll.u32 %s217_s0, 4  ;;  %s180_s15 = smov [#allocation2]   ;;  %s17_s14 = int_to_ptr.hbm [resolvable:$true] %s16_s14 }
   0x3   :  { %s18_s16 = sshll.u32 %s180_s15, 4  ;;  %s26_s19 = sshll.u32 %s218_s1, 4  ;;  %s19_s16 = int_to_ptr.vmem [resolvable:$true] %s18_s16  ;;  %s27_s19 = int_to_ptr.hbm [resolvable:$true] %s26_s19 }
   0x4   :  { %21 = dma.hbm_to_vmem [thread:$0]  %s17_s14, 128, %s19_s16, [#allocation3]  }
   0x5   :  { %s181_s20 = smov [#allocation5]   ;;  %s182_s22 = smov 128  }
   0x6   :  { %s28_s21 = sshll.u32 %s181_s20, 4  ;;  %s183_s23 = smov 8   ;;  %s29_s21 = int_to_ptr.vmem [resolvable:$true] %s28_s21 }
   0x7   :  { %34 = dma.hbm_to_vmem [thread:$0]  %s27_s19, 256, %s29_s21, [#allocation6], %s182_s22, %s182_s22, %s183_s23  }
   0x8   :  { %174 = dma.done.wait [#allocation3], 128  }
   0x9   :  { %175 = vsyncadd [#allocation3], 4294967168 }
   0xa   :  { %176 = dma.done.wait [#allocation6], 256  }
   0xb   :  { %177 = vsyncadd [#allocation6], 4294967040  ;;  %v47_v0 = vld [vmem:[#allocation5 + $0x8] sm:$0xff]  ;;  %v46_v1 = vld [vmem:[#allocation5] sm:$0xff]  ;;  %vm52_vm0 = vcmask 130048   ;;  %s184_s24 = smov [#allocation7]  }
   0xc   :  { %70 = vmatpush.msra.mxu0 %v47_v0  ;;  %v45_v2 = vld [vmem:[#allocation2] sm:$0xff]  ;;  %s82_s25 = sshll.u32 %s184_s24, 4  ;;  %s84_s28 = sshll.u32 %s220_s3, 4  ;;  %s83_s25 = int_to_ptr.vmem [resolvable:$true] %s82_s25  ;;  %s85_s28 = int_to_ptr.hbm [resolvable:$true] %s84_s28 }
   0xd   :  { %v101_v3 = vld [vmem:[%s219_s2] ss:$0 sm:$0xff] }
   0xe   :  { %71 = vmatpush.msra.mxu0 %v46_v1 }
   0xf   :  { %95 = vmatmul.msk.f32.vlgmr.msra.gmra.mxu0 %vm52_vm0, %v45_v2 }
  0x8c   :  { %v73_v4 = vpop.f32.mrf.mxu0 }
  0x8d   :  { %v74_v5 = vadd.f32 %v101_v3, %v73_v4 }
  0x8f   :  { %76 = vst [vmem:[#allocation7] sm:$0xff] %v74_v5 }
  0x90   :  { %87 = dma.vmem_to_hbm [thread:$0]  %s83_s25, 128, %s85_s28, [#allocation4]  }
  0x91   :  { %178 = dma.done.wait [#allocation4], 128  }
  0x92   :  { %179 = vsyncadd [#allocation4], 4294967168 }
  0x93   :  { %92 = vsyncpa [#allocation3], 1 }
  0x94   :  { %93 = vsyncpa [#allocation6], 1 }
  0x95   :  { %94 = vsyncpa [#allocation4], 1 }

</bundles_post_ra>
